<compile_context>
chip_gen: v7x
topology: tpu7x:2x2x1
jax: 0.10.0
libtpu: 0.0.40
codegen_flags: <defaults>
</compile_context>

<pallas_src>
import functools

import jax
import jax.numpy as jnp
from jax.experimental import pallas as pl
from jax.experimental.pallas import tpu as pltpu


def _round_up(x, m):
    return (x + m - 1) // m * m


def _make_conv_kernel(lc, wo, c_in):
    """Grouped-tap conv kernel: 5 MXU matmuls on the phase-concat slab.

    Channel-concat order of the slab is [ee, eo, oe, oo] (phase (dh%2, dw%2)).
    Taps grouped by flat row offset off = (dh//2)*(Wo+1) + (dw//2):
      off 0    : taps (0,0),(0,1),(1,0),(1,1)  K = 4*C_in  lanes [0   : 4C)
      off Wo+1 : taps (2,0),(2,1)              K = 2*C_in  lanes [0   : 2C)
      off 1    : tap  (0,2)                    K =   C_in  lanes [0   :  C)
      off 1    : tap  (1,2)                    K =   C_in  lanes [2C  : 3C)
      off Wo+2 : tap  (2,2)                    K =   C_in  lanes [0   :  C)
    Accumulation is f32; bias added once in f32; single cast on store.
    """
    off_b = wo + 1

    def kernel(x_ref, w0_ref, w1_ref, ws_ref, b_ref, o_ref):
        f32 = jnp.float32
        acc = jnp.dot(x_ref[0, 0:lc, :], w0_ref[...],
                      preferred_element_type=f32)
        acc = acc + jnp.dot(x_ref[0, off_b:off_b + lc, 0:2 * c_in],
                            w1_ref[...], preferred_element_type=f32)
        acc = acc + jnp.dot(x_ref[0, 1:1 + lc, 0:c_in],
                            ws_ref[0], preferred_element_type=f32)
        acc = acc + jnp.dot(x_ref[0, 1:1 + lc, 2 * c_in:3 * c_in],
                            ws_ref[1], preferred_element_type=f32)
        acc = acc + jnp.dot(x_ref[0, off_b + 1:off_b + 1 + lc, 0:c_in],
                            ws_ref[2], preferred_element_type=f32)
        acc = acc + b_ref[...].astype(f32)
        o_ref[0] = acc.astype(o_ref.dtype)

    return kernel


@functools.partial(jax.jit,
                   static_argnames=("padding", "compute_dtype", "out_dtype"))
def downsample_conv2d(x_nchw, weight, bias, *, padding=1,
                      compute_dtype=jnp.bfloat16, out_dtype=None):
    """Forward of Downsample(channels, use_conv=True, dims=2), NCHW in/out.

    x_nchw : (N, C_in, H, W)      -- same layout as the PyTorch module
    weight : (C_out, C_in, 3, 3)  -- PyTorch Conv2d OIHW
    bias   : (C_out,)
    returns: (N, C_out, Ho, Wo) in `out_dtype` (defaults to x dtype).
    """
    N, C_in, H, W = x_nchw.shape
    C_out = weight.shape[0]
    k, s = 3, 2
    Ho = (H + 2 * padding - k) // s + 1
    Wo = (W + 2 * padding - k) // s + 1
    odt = x_nchw.dtype if out_dtype is None else out_dtype

    # ---- geometry of the flattened polyphase slab ---------------------------
    L_out = Ho * (Wo + 1)                    # kernel output rows (col j==Wo junk)
    Lc = _round_up(L_out, 8)                 # sublane-aligned kernel output rows
    need_rows = Lc + Wo + 2                  # max slab row touched (off = Wo+2)
    phase_rows = max(Ho + 1, -(-need_rows // (Wo + 1)))
    L_slab = phase_rows * (Wo + 1)           # rows of the phase-concat slab
    Hp, Wp = 2 * phase_rows, 2 * Wo + 2      # forced padded spatial extents
    Cop = _round_up(C_out, 128)              # lane-dense out cols (= C_out if %128==0)
    Cc = 4 * C_in                            # phase-concatenated channels

    # ---- glue: cast + pad + polyphase gather + concat + flatten ------------
    # Strided slices / pad / cast fuse into the final NCHW->"NLC" transpose
    # under jit: one logical pass over the input, no im2col tensor, no
    # per-phase HBM arrays, no separate row-pad pass.
    x = x_nchw.astype(compute_dtype)
    x = jnp.pad(x, ((0, 0), (0, 0),
                    (padding, Hp - H - padding),
                    (padding, Wp - W - padding)))
    phases = [x[:, :, dh::2, dw::2]
              for (dh, dw) in ((0, 0), (0, 1), (1, 0), (1, 1))]
    slab = jnp.concatenate(phases, axis=1)              # (N, 4C, phase_rows, Wo+1)
    slab = jnp.transpose(slab, (0, 2, 3, 1))            # (N, phase_rows, Wo+1, 4C)
    slab = slab.reshape(N, L_slab, Cc)

    # ---- weights: per-tap (C_in, C_out) slices regrouped by row offset ------
    w = jnp.transpose(weight, (2, 3, 1, 0))             # (3, 3, C_in, C_out)
    w = jnp.pad(w, ((0, 0), (0, 0), (0, 0), (0, Cop - C_out))).astype(compute_dtype)
    w0 = jnp.concatenate([w[0, 0], w[0, 1], w[1, 0], w[1, 1]], axis=0)  # (4C, Cop)
    w1 = jnp.concatenate([w[2, 0], w[2, 1]], axis=0)                    # (2C, Cop)
    ws = jnp.stack([w[0, 2], w[1, 2], w[2, 2]], axis=0)                 # (3, C, Cop)
    b = jnp.pad(bias, (0, Cop - C_out)).astype(jnp.float32).reshape(1, Cop)

    # ---- explicit VMEM budget (v5e scoped default ~16 MiB is too small) -----
    cb = jnp.dtype(compute_dtype).itemsize
    ob = jnp.dtype(odt).itemsize
    block_bytes = (2 * L_slab * Cc * cb          # input slab, double-buffered
                   + 2 * 9 * C_in * Cop * cb     # grouped weights (conservative x2)
                   + 2 * Cop * 4                 # bias
                   + 2 * Lc * Cop * ob           # output block, double-buffered
                   + 3 * Lc * Cop * 4)           # f32 accumulator / dot temps
    vmem_limit = int(min(max(block_bytes * 5 // 4, 32 << 20), 100 << 20))

    out_full = pl.pallas_call(
        _make_conv_kernel(Lc, Wo, C_in),
        out_shape=jax.ShapeDtypeStruct((N, Lc, Cop), odt),
        grid_spec=pltpu.PrefetchScalarGridSpec(
            num_scalar_prefetch=0,
            grid=(N,),
            in_specs=[pl.BlockSpec((1, L_slab, Cc), lambda n: (n, 0, 0)),
                      pl.BlockSpec((4 * C_in, Cop), lambda n: (0, 0)),
                      pl.BlockSpec((2 * C_in, Cop), lambda n: (0, 0)),
                      pl.BlockSpec((3, C_in, Cop), lambda n: (0, 0, 0)),
                      pl.BlockSpec((1, Cop), lambda n: (0, 0))],
            out_specs=pl.BlockSpec((1, Lc, Cop), lambda n: (n, 0, 0)),
        ),
        compiler_params=pltpu.CompilerParams(
            dimension_semantics=("parallel",),
            vmem_limit_bytes=vmem_limit),
        cost_estimate=pl.CostEstimate(
            flops=2 * N * Lc * 9 * C_in * Cop,
            transcendentals=0,
            bytes_accessed=(N * L_slab * Cc * cb + 9 * C_in * Cop * cb
                            + Cop * 4 + N * Lc * Cop * ob)),
    )(slab, w0, w1, ws, b)

    # ---- crop lane/row padding + NCHW: one fused output-sized pass ----------
    out = out_full[:, :L_out, :C_out].reshape(N, Ho, Wo + 1, C_out)[:, :, :Wo, :]
    return jnp.transpose(out, (0, 3, 1, 2))


def _conv_ref(x, weight, bias, padding=1):
    C_out = weight.shape[0]
    return jax.lax.conv_general_dilated(
        x, weight, window_strides=(2, 2),
        padding=((padding, padding), (padding, padding)),
        dimension_numbers=("NCHW", "OIHW", "NCHW"),
    ) + bias.reshape(1, C_out, 1, 1)


if __name__ == "__main__":
    key = jax.random.PRNGKey(0)
    kx, kw, kb = jax.random.split(key, 3)

    # Small shapes consistent with the module: N=2, C=4, H=W=16
    N, C_in, H, W = 2, 4, 16, 16
    C_out = 4  # out_channels defaults to channels

    x = jax.random.normal(kx, (N, C_in, H, W), dtype=jnp.float32)
    weight = jax.random.normal(kw, (C_out, C_in, 3, 3), dtype=jnp.float32) * 0.1
    bias = jax.random.normal(kb, (C_out,), dtype=jnp.float32) * 0.1

    # (a) Tight geometry/indexing check: round inputs to bf16-representable
    #     values so the comparison is insensitive to MXU precision defaults,
    #     then the f32-compute kernel must match lax.conv closely.
    xq = x.astype(jnp.bfloat16).astype(jnp.float32)
    wq = weight.astype(jnp.bfloat16).astype(jnp.float32)
    bq = bias.astype(jnp.bfloat16).astype(jnp.float32)
    ref_q = _conv_ref(xq, wq, bq)
    y32 = jax.block_until_ready(
        downsample_conv2d(xq, wq, bq, compute_dtype=jnp.float32))
    assert y32.shape == (N, C_out, H // 2, W // 2), y32.shape
    err32 = float(jnp.max(jnp.abs(y32 - ref_q)))
    assert jnp.allclose(y32, ref_q, atol=5e-4, rtol=5e-4), err32

    # (b) Default fast path (bf16 operands, f32 accumulate) on full-precision
    #     inputs; tolerance appropriate for bf16 operands.
    ref = _conv_ref(x, weight, bias)
    y = jax.block_until_ready(downsample_conv2d(x, weight, bias))
    assert y.shape == (N, C_out, H // 2, W // 2), y.shape
    errbf = float(jnp.max(jnp.abs(y - ref)))
    assert jnp.allclose(y, ref, atol=5e-2, rtol=5e-2), errbf

    print("KERNEL_OK")
</pallas_src>

<mosaic_0001>
module attributes {stable_mosaic.version = 11 : i64} {
  func.func @kernel(%arg0: i32, %arg1: memref<1x90x16xf32, #tpu.memory_space<vmem>>, %arg2: memref<16x128xf32, #tpu.memory_space<vmem>>, %arg3: memref<8x128xf32, #tpu.memory_space<vmem>>, %arg4: memref<3x4x128xf32, #tpu.memory_space<vmem>>, %arg5: memref<1x128xf32, #tpu.memory_space<vmem>>, %arg6: memref<1x72x128xf32, #tpu.memory_space<vmem>>) attributes {dimension_semantics = [#tpu.dimension_semantics<parallel>], iteration_bounds = array<i64: 2>, scalar_prefetch = 0 : i64, scratch_operands = 0 : i64, tpu.core_type = #tpu.core_type<tc>, window_params = [{transform_indices = @transform_0, window_bounds = array<i64: 1, 90, 16>}, {pipeline_mode = #tpu.pipeline_mode<synchronous>, transform_indices = @transform_1, window_bounds = array<i64: 16, 128>}, {pipeline_mode = #tpu.pipeline_mode<synchronous>, transform_indices = @transform_2, window_bounds = array<i64: 8, 128>}, {pipeline_mode = #tpu.pipeline_mode<synchronous>, transform_indices = @transform_3, window_bounds = array<i64: 3, 4, 128>}, {pipeline_mode = #tpu.pipeline_mode<synchronous>, transform_indices = @transform_4, window_bounds = array<i64: 1, 128>}, {transform_indices = @transform_5, window_bounds = array<i64: 1, 72, 128>}]} {
    %c0 = arith.constant 0 : index
    %c0_0 = arith.constant 0 : index
    %c0_1 = arith.constant 0 : index
    %0 = vector.load %arg1[%c0, %c0_0, %c0_1] : memref<1x90x16xf32, #tpu.memory_space<vmem>>, vector<1x72x16xf32>
    %1 = vector.shape_cast %0 : vector<1x72x16xf32> to vector<72x16xf32>
    %c0_2 = arith.constant 0 : index
    %c0_3 = arith.constant 0 : index
    %2 = vector.load %arg2[%c0_2, %c0_3] : memref<16x128xf32, #tpu.memory_space<vmem>>, vector<16x128xf32>
    %cst = arith.constant dense<0.000000e+00> : vector<72x128xf32>
    %3 = tpu.matmul %1, %2, %cst {dimension_numbers = #tpu.dot_dimension_numbers<[1], [0], [0], [1], [0, 0, 1, 1], [], []>} : vector<72x16xf32>, vector<16x128xf32>, vector<72x128xf32> -> vector<72x128xf32>
    %c0_4 = arith.constant 0 : index
    %c9 = arith.constant 9 : index
    %c0_5 = arith.constant 0 : index
    %4 = vector.load %arg1[%c0_4, %c9, %c0_5] : memref<1x90x16xf32, #tpu.memory_space<vmem>>, vector<1x72x8xf32>
    %5 = vector.shape_cast %4 : vector<1x72x8xf32> to vector<72x8xf32>
    %c0_6 = arith.constant 0 : index
    %c0_7 = arith.constant 0 : index
    %6 = vector.load %arg3[%c0_6, %c0_7] : memref<8x128xf32, #tpu.memory_space<vmem>>, vector<8x128xf32>
    %cst_8 = arith.constant dense<0.000000e+00> : vector<72x128xf32>
    %7 = tpu.matmul %5, %6, %cst_8 {dimension_numbers = #tpu.dot_dimension_numbers<[1], [0], [0], [1], [0, 0, 1, 1], [], []>} : vector<72x8xf32>, vector<8x128xf32>, vector<72x128xf32> -> vector<72x128xf32>
    %8 = arith.addf %3, %7 : vector<72x128xf32>
    %c0_9 = arith.constant 0 : index
    %c1 = arith.constant 1 : index
    %c0_10 = arith.constant 0 : index
    %9 = vector.load %arg1[%c0_9, %c1, %c0_10] : memref<1x90x16xf32, #tpu.memory_space<vmem>>, vector<1x72x4xf32>
    %10 = vector.shape_cast %9 : vector<1x72x4xf32> to vector<72x4xf32>
    %c0_11 = arith.constant 0 : index
    %c0_12 = arith.constant 0 : index
    %c0_13 = arith.constant 0 : index
    %11 = vector.load %arg4[%c0_11, %c0_12, %c0_13] : memref<3x4x128xf32, #tpu.memory_space<vmem>>, vector<1x4x128xf32>
    %12 = vector.shape_cast %11 : vector<1x4x128xf32> to vector<4x128xf32>
    %cst_14 = arith.constant dense<0.000000e+00> : vector<72x128xf32>
    %13 = tpu.matmul %10, %12, %cst_14 {dimension_numbers = #tpu.dot_dimension_numbers<[1], [0], [0], [1], [0, 0, 1, 1], [], []>} : vector<72x4xf32>, vector<4x128xf32>, vector<72x128xf32> -> vector<72x128xf32>
    %14 = arith.addf %8, %13 : vector<72x128xf32>
    %c0_15 = arith.constant 0 : index
    %c1_16 = arith.constant 1 : index
    %c8 = arith.constant 8 : index
    %15 = vector.load %arg1[%c0_15, %c1_16, %c8] : memref<1x90x16xf32, #tpu.memory_space<vmem>>, vector<1x72x4xf32>
    %16 = vector.shape_cast %15 : vector<1x72x4xf32> to vector<72x4xf32>
    %c1_17 = arith.constant 1 : index
    %c0_18 = arith.constant 0 : index
    %c0_19 = arith.constant 0 : index
    %17 = vector.load %arg4[%c1_17, %c0_18, %c0_19] : memref<3x4x128xf32, #tpu.memory_space<vmem>>, vector<1x4x128xf32>
    %18 = vector.shape_cast %17 : vector<1x4x128xf32> to vector<4x128xf32>
    %cst_20 = arith.constant dense<0.000000e+00> : vector<72x128xf32>
    %19 = tpu.matmul %16, %18, %cst_20 {dimension_numbers = #tpu.dot_dimension_numbers<[1], [0], [0], [1], [0, 0, 1, 1], [], []>} : vector<72x4xf32>, vector<4x128xf32>, vector<72x128xf32> -> vector<72x128xf32>
    %20 = arith.addf %14, %19 : vector<72x128xf32>
    %c0_21 = arith.constant 0 : index
    %c10 = arith.constant 10 : index
    %c0_22 = arith.constant 0 : index
    %21 = vector.load %arg1[%c0_21, %c10, %c0_22] : memref<1x90x16xf32, #tpu.memory_space<vmem>>, vector<1x72x4xf32>
    %22 = vector.shape_cast %21 : vector<1x72x4xf32> to vector<72x4xf32>
    %c2 = arith.constant 2 : index
    %c0_23 = arith.constant 0 : index
    %c0_24 = arith.constant 0 : index
    %23 = vector.load %arg4[%c2, %c0_23, %c0_24] : memref<3x4x128xf32, #tpu.memory_space<vmem>>, vector<1x4x128xf32>
    %24 = vector.shape_cast %23 : vector<1x4x128xf32> to vector<4x128xf32>
    %cst_25 = arith.constant dense<0.000000e+00> : vector<72x128xf32>
    %25 = tpu.matmul %22, %24, %cst_25 {dimension_numbers = #tpu.dot_dimension_numbers<[1], [0], [0], [1], [0, 0, 1, 1], [], []>} : vector<72x4xf32>, vector<4x128xf32>, vector<72x128xf32> -> vector<72x128xf32>
    %26 = arith.addf %20, %25 : vector<72x128xf32>
    %c0_26 = arith.constant 0 : index
    %c0_27 = arith.constant 0 : index
    %27 = vector.load %arg5[%c0_26, %c0_27] : memref<1x128xf32, #tpu.memory_space<vmem>>, vector<1x128xf32>
    %28 = vector.broadcast %27 : vector<1x128xf32> to vector<72x128xf32>
    %29 = arith.addf %26, %28 : vector<72x128xf32>
    %c0_28 = arith.constant 0 : index
    %c0_29 = arith.constant 0 : index
    %c0_30 = arith.constant 0 : index
    %30 = vector.load %arg6[%c0_28, %c0_29, %c0_30] : memref<1x72x128xf32, #tpu.memory_space<vmem>>, vector<1x72x128xf32>
    %31 = vector.shape_cast %30 : vector<1x72x128xf32> to vector<72x128xf32>
    %32 = vector.shape_cast %29 : vector<72x128xf32> to vector<1x72x128xf32>
    tpu.vector_store %arg6[%c0_28, %c0_29, %c0_30], %32 {strides = array<i32>} : memref<1x72x128xf32, #tpu.memory_space<vmem>>, vector<1x72x128xf32>,
    return
  }
  func.func @transform_0(%arg0: i32) -> (i32, i32, i32) {
    %c0_i32 = arith.constant 0 : i32
    %c0_i32_0 = arith.constant 0 : i32
    %c0_i32_1 = arith.constant 0 : i32
    return %arg0, %c0_i32, %c0_i32_0 : i32, i32, i32
  }
  func.func @transform_1(%arg0: i32) -> (i32, i32) {
    %c0_i32 = arith.constant 0 : i32
    %c0_i32_0 = arith.constant 0 : i32
    %c0_i32_1 = arith.constant 0 : i32
    return %c0_i32, %c0_i32_0 : i32, i32
  }
  func.func @transform_2(%arg0: i32) -> (i32, i32) {
    %c0_i32 = arith.constant 0 : i32
    %c0_i32_0 = arith.constant 0 : i32
    %c0_i32_1 = arith.constant 0 : i32
    return %c0_i32, %c0_i32_0 : i32, i32
  }
  func.func @transform_3(%arg0: i32) -> (i32, i32, i32) {
    %c0_i32 = arith.constant 0 : i32
    %c0_i32_0 = arith.constant 0 : i32
    %c0_i32_1 = arith.constant 0 : i32
    %c0_i32_2 = arith.constant 0 : i32
    return %c0_i32, %c0_i32_0, %c0_i32_1 : i32, i32, i32
  }
  func.func @transform_4(%arg0: i32) -> (i32, i32) {
    %c0_i32 = arith.constant 0 : i32
    %c0_i32_0 = arith.constant 0 : i32
    %c0_i32_1 = arith.constant 0 : i32
    return %c0_i32, %c0_i32_0 : i32, i32
  }
  func.func @transform_5(%arg0: i32) -> (i32, i32, i32) {
    %c0_i32 = arith.constant 0 : i32
    %c0_i32_0 = arith.constant 0 : i32
    %c0_i32_1 = arith.constant 0 : i32
    return %arg0, %c0_i32, %c0_i32_0 : i32, i32, i32
  }
}

</mosaic_0001>

<bundles_post_ra>
// kernel: downsample_conv2d.1
= control target key start
LH: loop header
LB: loop body
LE: loop exit
PB: predicated region body
PF: predicated region fallthrough
CT: control target
= control target key end

     0   :  { %s1402_s18 = smov 0   ;;  %s1689_s0 = inlined_call_operand.vmem [shape: f32[2,90,16], index: 0, kind: input, shape index: {}]   ;;  %s1690_s1 = inlined_call_operand.vmem [shape: f32[16,128], index: 1, kind: input, shape index: {}]   ;;  %s1691_s2 = inlined_call_operand.vmem [shape: f32[8,128], index: 2, kind: input, shape index: {}]   ;;  %s1692_s3 = inlined_call_operand.vmem [shape: f32[3,4,128], index: 3, kind: input, shape index: {}]   ;;  %s1693_s4 = inlined_call_operand.vmem [shape: f32[1,128], index: 4, kind: input, shape index: {}]   ;;  %s1694_s5 = inlined_call_operand.vmem [shape: f32[2,72,128], index: 5, kind: output, shape index: {}]  }
   0x1 LB: > { %s1083_s19 = sadd.s32 4294967295, %s1366_s18   ;;  %p1087_p0 = scmp.ge.s32.totalorder %s1366_s18, 1  ;;  %s1366_s18 = sphi %s1402_s18, %s15_s18  }
   0x2   : > { %p187_p1 = scmp.lt.s32.totalorder %s1366_s18, 3 }
   0x4   : > { %p188_p2 = pnand %p1087_p0, %p187_p1 }
   0x5   : > { %p215_p3 = scmp.lt.s32.totalorder (!%p188_p2), %s1083_s19, 1  ;;  %v245_v0 = vld [vmem:[%s1691_s2] sm:$0xff] (!%p188_p2)  ;;  %v1368_v1 = vmov (!%p188_p2), 0.0   ;;  %vm1369_vm0 = vmmov (!%p188_p2), 0   ;;  %v1370_v2 = vmov (!%p188_p2), 0.0|0.0   ;;  %v235_v4 = vld [vmem:[%s1690_s1 + $0x8] sm:$0xff] (!%p188_p2) }
   0x6   : > { %191 = sbr.rel (%p188_p2) target bundleno = 384 (0x180), region = 40  ;;  %1194 = vmatprep.subr.mxu0 (!%p188_p2), %v1368_v1  ;;  %1196 = vmatprep.mubr.msk.f32.mxu0 (!%p188_p2), %vm1369_vm0, %v1368_v1  ;;  %v234_v3 = vld [vmem:[%s1690_s1] sm:$0xff] (!%p188_p2)  ;;  %vm246_vm1 = vcmask (!%p188_p2), 64512   ;;  %s1371_s30 = smov (!%p188_p2), 120   ;;  %vm560_vm2 = vcmask (!%p188_p2), 1043456   ;;  %vm384_vm3 = vcmask (!%p188_p2), 130048  }
   0x7   : > { %1195 = vmatpush3.msra.mxu0 (!%p188_p2), %v245_v0  ;;  %1344 = vmatprep.subr.mxu1 (!%p188_p2), %v1368_v1  ;;  %v1342_v7 = vpack.c.bf16 (!%p188_p2), %v235_v4, %v234_v3  ;;  %v531_v11 = vld [vmem:[%s1692_s3] sm:$0xf] (!%p188_p2)  ;;  %v1118_v18 = vld [vmem:[%s1692_s3 + $0x4] sm:$0xf] (!%p188_p2)  ;;  %vm532_vm4 = vcmask (!%p188_p2), 31744  }
   0x8   : > { %1345 = vmatpush3.msra.mxu1 (!%p188_p2), %v245_v0  ;;  %1211 = vmatprep.mubr.msk.f32.mxu1 (!%p188_p2), %vm1369_vm0, %v1368_v1  ;;  %v1129_v20 = vld [vmem:[%s1692_s3 + $0x8] sm:$0xf] (!%p188_p2) }
   0x9   : > { %1341 = vmatprep.subr.bf16.mxu1 (!%p188_p2), %v1370_v2  ;;  %1254 = vmatprep.subr.mxu0 (!%p188_p2), %v1368_v1 }
   0xd   : > { %s1696_s19 = smov (!%p215_p3, %s1083_s19), 1 }
   0xe   : > { %s1346_s22 = smul.u32 96, %s1696_s19 }
   0xf   : > { %s1347_s12 = smul.u32 72, %s1696_s19 }
  0x10   : > { %s1432_s29 = scalar_lea.vmem %s1689_s0, %s1346_s22 }
  0x11   : > { %v522_v5 = vld [vmem:[%s1432_s29 + $0x1] sm:$0xff]  ;;  %v1436_v6 = vld [vmem:[%s1432_s29 + $0x11] sm:$0xff]  ;;  %v523_v8 = vld [vmem:[%s1432_s29 + $0x9] sm:$0xff]  ;;  %s1667_s17 = scalar_lea.vmem %s1694_s5, %s1347_s12 }
  0x12   : > { %685 = vrot.lane.b32.xlu0 %v522_v5, %s1371_s30  ;;  %689 = vrot.lane.b32.xlu1 %v1436_v6, %s1371_s30  ;;  %v1443_v9 = vld [vmem:[%s1432_s29 + $0x19] sm:$0xff]  ;;  %v1446_v10 = vld [vmem:[%s1432_s29 + $0x31] sm:$0xff] }
  0x13   : > { %1197 = vmatmul.mubr.msk.f32.vlgmr.msra.gmra.mrb[0].mxu0 %vm246_vm1, %v523_v8  ;;  %1212 = vmatmul.mubr.msk.f32.vlgmr.msra.gmra.mrb[0].mxu1 %vm246_vm1, %v1446_v10  ;;  %v526_v12 = vld [vmem:[%s1432_s29 + $0x21] sm:$0xff]  ;;  %v527_v13 = vld [vmem:[%s1432_s29 + $0x29] sm:$0xff]  ;;  %v1464_v14 = vld [vmem:[%s1432_s29 + $0x39] sm:$0xff] }
  0x14   : > { %1199 = vmatprep.mubr.msk.f32.mxu0 %vm1369_vm0, %v1368_v1  ;;  %1214 = vmatprep.mubr.msk.f32.mxu1 %vm1369_vm0, %v1368_v1  ;;  %v1479_v15 = vld [vmem:[%s1432_s29 + $0x41] sm:$0xff]  ;;  %v244_v16 = vld [vmem:[%s1432_s29 + $0x49] sm:$0xff]  ;;  %v228_v22 = vld [vmem:[%s1432_s29 + $0x18] sm:$0xff] }
  0x15   : > { %1343 = vmatpush3.bf16.msra.mxu1 %v1342_v7  ;;  %1255 = vmatpush3.msk.msra.mxu0 %vm560_vm2, %v531_v11  ;;  %v225_v17 = vld [vmem:[%s1432_s29] sm:$0xff]  ;;  %v226_v19 = vld [vmem:[%s1432_s29 + $0x8] sm:$0xff]  ;;  %v227_v21 = vld [vmem:[%s1432_s29 + $0x10] sm:$0xff] }
  0x16   : > { %687 = vrot.lane.b32.xlu0 %v523_v8, %s1371_s30  ;;  %691 = vrot.lane.b32.xlu1 %v1443_v9, %s1371_s30  ;;  %v229_v23 = vld [vmem:[%s1432_s29 + $0x20] sm:$0xff]  ;;  %v230_v24 = vld [vmem:[%s1432_s29 + $0x28] sm:$0xff] }
  0x17   : > { %1200 = vmatmul.mubr.msk.f32.gmra.mrb[2].mxu0 %vm246_vm1, %v1436_v6  ;;  %1283 = vmatprep.subr.mxu1 %v1368_v1  ;;  %v231_v25 = vld [vmem:[%s1432_s29 + $0x30] sm:$0xff]  ;;  %v232_v26 = vld [vmem:[%s1432_s29 + $0x38] sm:$0xff]  ;;  %v233_v27 = vld [vmem:[%s1432_s29 + $0x40] sm:$0xff] }
  0x18   : > { %1215 = vmatmul.mubr.msk.f32.gmra.mrb[2].mxu1 %vm246_vm1, %v1464_v14  ;;  %1202 = vmatprep.mubr.msk.f32.mxu0 %vm1369_vm0, %v1368_v1  ;;  %v843_v28 = vld [vmem:[%s1432_s29 + $0xa] sm:$0xff]  ;;  %v844_v29 = vld [vmem:[%s1432_s29 + $0x12] sm:$0xff]  ;;  %v845_v30 = vld [vmem:[%s1432_s29 + $0x1a] sm:$0xff] }
  0x19   : > { %1217 = vmatprep.mubr.msk.f32.mxu1 %vm1369_vm0, %v1368_v1  ;;  %1312 = vmatprep.subr.mxu0 %v1368_v1  ;;  %v846_v31 = vld [vmem:[%s1432_s29 + $0x22] sm:$0xff]  ;;  %v847_v32 = vld [vmem:[%s1432_s29 + $0x2a] sm:$0xff]  ;;  %v848_v33 = vld [vmem:[%s1432_s29 + $0x32] sm:$0xff] }
  0x1a   : > { %693 = vrot.lane.b32.xlu0 %v526_v12, %s1371_s30  ;;  %695 = vrot.lane.b32.xlu1 %v527_v13, %s1371_s30  ;;  %v849_v34 = vld [vmem:[%s1432_s29 + $0x3a] sm:$0xff]  ;;  %v850_v35 = vld [vmem:[%s1432_s29 + $0x42] sm:$0xff] }
  0x1b   : > { %1203 = vmatmul.mubr.msk.f32.gmra.mrb[4].mxu0 %vm246_vm1, %v1443_v9  ;;  %v851_v36 = vld [vmem:[%s1432_s29 + $0x4a] sm:$0xff] }
  0x1c   : > { %1218 = vmatmul.mubr.msk.f32.gmra.mrb[4].mxu1 %vm246_vm1, %v1479_v15  ;;  %1205 = vmatprep.mubr.msk.f32.mxu0 %vm1369_vm0, %v1368_v1 }
  0x1d   : > { %1220 = vmatprep.mubr.msk.f32.mxu1 %vm1369_vm0, %v1368_v1 }
  0x1e   : > { %697 = vrot.lane.b32.xlu0 %v1446_v10, %s1371_s30  ;;  %699 = vrot.lane.b32.xlu1 %v1464_v14, %s1371_s30 }
  0x1f   : > { %1206 = vmatmul.mubr.msk.f32.gmra.mrb[6].mxu0 %vm246_vm1, %v526_v12 }
  0x20   : > { %1221 = vmatmul.mubr.msk.f32.gmra.mrb[6].mxu1 %vm246_vm1, %v244_v16  ;;  %1208 = vmatprep.mubr.msk.f32.mxu0 %vm1369_vm0, %v1368_v1 }
  0x21   : > { %1227 = vmatprep.mubr.msk.f32.mxu1 %vm1369_vm0, %v1368_v1 }
  0x22   : > { %701 = vrot.lane.b32.xlu0 %v1479_v15, %s1371_s30 }
  0x23   : > { %1209 = vmatmul.mubr.msk.f32.gmra.mrb[8].mxu0 %vm246_vm1, %v527_v13 }
  0x24   : > { %1228 = vmatmul.mubr.msk.f32.vlgmr.msra.gmra.mrb[8].mxu1 %vm384_vm3, %v225_v17  ;;  %1256 = vmatprep.mubr.msk.f32.mxu0 %vm1369_vm0, %v1368_v1 }
  0x25   : > { %1230 = vmatprep.mubr.msk.f32.mxu1 %vm1369_vm0, %v1368_v1  ;;  %1284 = vmatpush3.msk.msra.mxu1 %vm560_vm2, %v1118_v18 }
  0x27   : > { %1257 = vmatmul.mubr.msk.f32.vlgmr.msra.gmra.mrb[10].mxu0 %vm532_vm4, %v522_v5 }
  0x28   : > { %1231 = vmatmul.mubr.msk.f32.gmra.mrb[10].mxu1 %vm384_vm3, %v226_v19  ;;  %1259 = vmatprep.mubr.msk.f32.mxu0 %vm1369_vm0, %v1368_v1 }
  0x29   : > { %1233 = vmatprep.mubr.msk.f32.mxu1 %vm1369_vm0, %v1368_v1  ;;  %1313 = vmatpush3.msk.msra.mxu0 %vm560_vm2, %v1129_v20 }
  0x2b   : > { %1260 = vmatmul.mubr.msk.f32.gmra.mrb[12].mxu0 %vm532_vm4, %v523_v8 }
  0x2c   : > { %1234 = vmatmul.mubr.msk.f32.gmra.mrb[12].mxu1 %vm384_vm3, %v227_v21  ;;  %1262 = vmatprep.mubr.msk.f32.mxu0 %vm1369_vm0, %v1368_v1 }
  0x2d   : > { %1236 = vmatprep.mubr.msk.f32.mxu1 %vm1369_vm0, %v1368_v1 }
  0x2f   : > { %1263 = vmatmul.mubr.msk.f32.gmra.mrb[14].mxu0 %vm532_vm4, %v1436_v6 }
  0x30   : > { %1237 = vmatmul.mubr.msk.f32.gmra.mrb[14].mxu1 %vm384_vm3, %v228_v22  ;;  %1265 = vmatprep.mubr.msk.f32.mxu0 %vm1369_vm0, %v1368_v1 }
  0x31   : > { %1239 = vmatprep.mubr.msk.f32.mxu1 %vm1369_vm0, %v1368_v1 }
  0x33   : > { %1266 = vmatmul.mubr.msk.f32.gmra.mrb[16].mxu0 %vm532_vm4, %v1443_v9 }
  0x34   : > { %1240 = vmatmul.mubr.msk.f32.gmra.mrb[16].mxu1 %vm384_vm3, %v229_v23  ;;  %1268 = vmatprep.mubr.msk.f32.mxu0 %vm1369_vm0, %v1368_v1 }
  0x35   : > { %1242 = vmatprep.mubr.msk.f32.mxu1 %vm1369_vm0, %v1368_v1 }
  0x37   : > { %1269 = vmatmul.mubr.msk.f32.gmra.mrb[18].mxu0 %vm532_vm4, %v526_v12 }
  0x38   : > { %1243 = vmatmul.mubr.msk.f32.gmra.mrb[18].mxu1 %vm384_vm3, %v230_v24  ;;  %1271 = vmatprep.mubr.msk.f32.mxu0 %vm1369_vm0, %v1368_v1 }
  0x39   : > { %1245 = vmatprep.mubr.msk.f32.mxu1 %vm1369_vm0, %v1368_v1 }
  0x3b   : > { %1272 = vmatmul.mubr.msk.f32.gmra.mrb[20].mxu0 %vm532_vm4, %v527_v13 }
  0x3c   : > { %1246 = vmatmul.mubr.msk.f32.gmra.mrb[20].mxu1 %vm384_vm3, %v231_v25  ;;  %1274 = vmatprep.mubr.msk.f32.mxu0 %vm1369_vm0, %v1368_v1 }
  0x3d   : > { %1248 = vmatprep.mubr.msk.f32.mxu1 %vm1369_vm0, %v1368_v1 }
  0x3f   : > { %1275 = vmatmul.mubr.msk.f32.gmra.mrb[22].mxu0 %vm532_vm4, %v1446_v10 }
  0x40   : > { %1249 = vmatmul.mubr.msk.f32.gmra.mrb[22].mxu1 %vm384_vm3, %v232_v26  ;;  %1277 = vmatprep.mubr.msk.f32.mxu0 %vm1369_vm0, %v1368_v1 }
  0x41   : > { %1251 = vmatprep.mubr.msk.f32.mxu1 %vm1369_vm0, %v1368_v1 }
  0x43   : > { %1278 = vmatmul.mubr.msk.f32.gmra.mrb[24].mxu0 %vm532_vm4, %v1464_v14 }
  0x44   : > { %1252 = vmatmul.mubr.msk.f32.gmra.mrb[24].mxu1 %vm384_vm3, %v233_v27  ;;  %1280 = vmatprep.mubr.msk.f32.mxu0 %vm1369_vm0, %v1368_v1 }
  0x45   : > { %1285 = vmatprep.mubr.msk.f32.mxu1 %vm1369_vm0, %v1368_v1 }
  0x47   : > { %1281 = vmatmul.mubr.msk.f32.gmra.mrb[26].mxu0 %vm532_vm4, %v1479_v15 }
  0x48   : > { %1314 = vmatprep.mubr.msk.f32.mxu0 %vm1369_vm0, %v1368_v1 }
  0x4b   : > { %1315 = vmatmul.mubr.msk.f32.vlgmr.msra.gmra.mrb[28].mxu0 %vm532_vm4, %v843_v28 }
  0x4c   : > { %1317 = vmatprep.mubr.msk.f32.mxu0 %vm1369_vm0, %v1368_v1 }
  0x4f   : > { %1318 = vmatmul.mubr.msk.f32.gmra.mrb[30].mxu0 %vm532_vm4, %v844_v29 }
  0x50   : > { %1320 = vmatprep.mubr.msk.f32.mxu0 %vm1369_vm0, %v1368_v1 }
  0x53   : > { %1321 = vmatmul.mubr.msk.f32.gmra.mrb[32].mxu0 %vm532_vm4, %v845_v30 }
  0x54   : > { %1323 = vmatprep.mubr.msk.f32.mxu0 %vm1369_vm0, %v1368_v1 }
  0x57   : > { %1324 = vmatmul.mubr.msk.f32.gmra.mrb[34].mxu0 %vm532_vm4, %v846_v31 }
  0x58   : > { %1326 = vmatprep.mubr.msk.f32.mxu0 %vm1369_vm0, %v1368_v1 }
  0x5b   : > { %1327 = vmatmul.mubr.msk.f32.gmra.mrb[36].mxu0 %vm532_vm4, %v847_v32 }
  0x5c   : > { %1329 = vmatprep.mubr.msk.f32.mxu0 %vm1369_vm0, %v1368_v1 }
  0x5f   : > { %1330 = vmatmul.mubr.msk.f32.gmra.mrb[38].mxu0 %vm532_vm4, %v848_v33 }
  0x60   : > { %1332 = vmatprep.mubr.msk.f32.mxu0 %vm1369_vm0, %v1368_v1 }
  0x63   : > { %1333 = vmatmul.mubr.msk.f32.gmra.mrb[40].mxu0 %vm532_vm4, %v849_v34 }
  0x64   : > { %1335 = vmatprep.mubr.msk.f32.mxu0 %vm1369_vm0, %v1368_v1 }
  0x67   : > { %1336 = vmatmul.mubr.msk.f32.gmra.mrb[42].mxu0 %vm532_vm4, %v850_v35 }
  0x68   : > { %1338 = vmatprep.mubr.msk.f32.mxu0 %vm1369_vm0, %v1368_v1 }
  0x6b   : > { %1339 = vmatmul.mubr.msk.f32.gmra.mrb[44].mxu0 %vm532_vm4, %v851_v36 }
  0x84   : > { %v686_v37 = vpop.permute.xlu0 %685  ;;  %v690_v39 = vpop.permute.xlu1 %689 }
  0x85   : > { %1286 = vmatmul.mubr.msk.f32.vlgmr.msra.gmra.mrb[26].mxu1 %vm532_vm4, %v686_v37 }
  0x86   : > { %1288 = vmatprep.mubr.msk.f32.mxu1 %vm1369_vm0, %v1368_v1 }
  0x88   : > { %v688_v38 = vpop.permute.xlu0 %687  ;;  %v692_v40 = vpop.permute.xlu1 %691 }
  0x89   : > { %1289 = vmatmul.mubr.msk.f32.gmra.mrb[28].mxu1 %vm532_vm4, %v688_v38 }
  0x8a   : > { %1291 = vmatprep.mubr.msk.f32.mxu1 %vm1369_vm0, %v1368_v1 }
  0x8c   : > { %v694_v41 = vpop.permute.xlu0 %693  ;;  %v696_v42 = vpop.permute.xlu1 %695 }
  0x8d   : > { %1292 = vmatmul.mubr.msk.f32.gmra.mrb[30].mxu1 %vm532_vm4, %v690_v39 }
  0x8e   : > { %1294 = vmatprep.mubr.msk.f32.mxu1 %vm1369_vm0, %v1368_v1 }
  0x90   : > { %v698_v43 = vpop.permute.xlu0 %697  ;;  %v700_v44 = vpop.permute.xlu1 %699 }
  0x91   : > { %1295 = vmatmul.mubr.msk.f32.gmra.mrb[32].mxu1 %vm532_vm4, %v692_v40 }
  0x92   : > { %1297 = vmatprep.mubr.msk.f32.mxu1 %vm1369_vm0, %v1368_v1 }
  0x94   : > { %v702_v45 = vpop.permute.xlu0 %701 }
  0x95   : > { %1298 = vmatmul.mubr.msk.f32.gmra.mrb[34].mxu1 %vm532_vm4, %v694_v41 }
  0x96   : > { %1300 = vmatprep.mubr.msk.f32.mxu1 %vm1369_vm0, %v1368_v1 }
  0x99   : > { %1301 = vmatmul.mubr.msk.f32.gmra.mrb[36].mxu1 %vm532_vm4, %v696_v42 }
  0x9a   : > { %1303 = vmatprep.mubr.msk.f32.mxu1 %vm1369_vm0, %v1368_v1 }
  0x9d   : > { %1304 = vmatmul.mubr.msk.f32.gmra.mrb[38].mxu1 %vm532_vm4, %v698_v43 }
  0x9e   : > { %1306 = vmatprep.mubr.msk.f32.mxu1 %vm1369_vm0, %v1368_v1 }
  0xa1   : > { %1307 = vmatmul.mubr.msk.f32.gmra.mrb[40].mxu1 %vm532_vm4, %v700_v44 }
  0xa2   : > { %1309 = vmatprep.mubr.msk.f32.mxu1 %vm1369_vm0, %v1368_v1 }
  0xa5   : > { %1310 = vmatmul.mubr.msk.f32.gmra.mrb[42].mxu1 %vm532_vm4, %v702_v45 }
  0xe6   : > { %v340_v46 = vpop.f32.mrb[0].mxu0  ;;  %v365_v47 = vpop.f32.mrb[0].mxu1 }
  0xe7   : > { %v1198_v48 = vpop.f32.mrb[1].mxu0  ;;  %v1213_v49 = vpop.f32.mrb[1].mxu1 }
  0xea   : > { %v345_v50 = vpop.f32.mrb[2].mxu0 }
  0xeb   : > { %v370_v51 = vpop.f32.mrb[2].mxu1  ;;  %v1201_v52 = vpop.f32.mrb[3].mxu0 }
  0xec   : > { %v1216_v53 = vpop.f32.mrb[3].mxu1 }
  0xee   : > { %v350_v54 = vpop.f32.mrb[4].mxu0 }
  0xef   : > { %v375_v55 = vpop.f32.mrb[4].mxu1  ;;  %v1204_v56 = vpop.f32.mrb[5].mxu0 }
  0xf0   : > { %v1219_v57 = vpop.f32.mrb[5].mxu1 }
  0xf2   : > { %v355_v58 = vpop.f32.mrb[6].mxu0 }
  0xf3   : > { %v380_v59 = vpop.f32.mrb[6].mxu1  ;;  %v1207_v60 = vpop.f32.mrb[7].mxu0 }
  0xf4   : > { %v1222_v61 = vpop.f32.mrb[7].mxu1 }
  0xf6   : > { %v360_v62 = vpop.f32.mrb[8].mxu0 }
  0xf7   : > { %v478_v63 = vpop.f32.mrb[8].mxu1  ;;  %v1210_v0 = vpop.f32.mrb[9].mxu0 }
  0xf8   : > { %v479_v1 = vadd.f32 %v478_v63, %v340_v46  ;;  %v1229_v2 = vpop.f32.mrb[9].mxu1 }
  0xfa   : > { %v630_v3 = vpop.f32.mrb[10].mxu0 }
  0xfb   : > { %v483_v4 = vpop.f32.mrb[10].mxu1  ;;  %v1641_v5 = vadd.f32 %v630_v3, %v479_v1  ;;  %v1258_v6 = vpop.f32.mrb[11].mxu0 }
  0xfc   : > { %v484_v7 = vadd.f32 %v483_v4, %v345_v50  ;;  %v1232_v8 = vpop.f32.mrb[11].mxu1 }
  0xfe   : > { %v635_v9 = vpop.f32.mrb[12].mxu0 }
  0xff   : > { %v488_v10 = vpop.f32.mrb[12].mxu1  ;;  %v1643_v11 = vadd.f32 %v635_v9, %v484_v7  ;;  %v1261_v12 = vpop.f32.mrb[13].mxu0 }
 0x100   : > { %v489_v13 = vadd.f32 %v488_v10, %v350_v54  ;;  %v1235_v14 = vpop.f32.mrb[13].mxu1 }
 0x102   : > { %v640_v15 = vpop.f32.mrb[14].mxu0 }
 0x103   : > { %v493_v16 = vpop.f32.mrb[14].mxu1  ;;  %v1645_v17 = vadd.f32 %v640_v15, %v489_v13  ;;  %v1264_v18 = vpop.f32.mrb[15].mxu0  ;;  %v1140_v13 = vld [vmem:[%s1693_s4] ss:$0 sm:$0xff] }
 0x104   : > { %v494_v19 = vadd.f32 %v493_v16, %v355_v58  ;;  %v1238_v20 = vpop.f32.mrb[15].mxu1 }
 0x106   : > { %v645_v21 = vpop.f32.mrb[16].mxu0 }
 0x107   : > { %v498_v22 = vpop.f32.mrb[16].mxu1  ;;  %v1647_v23 = vadd.f32 %v645_v21, %v494_v19  ;;  %v1267_v24 = vpop.f32.mrb[17].mxu0 }
 0x108   : > { %v499_v25 = vadd.f32 %v498_v22, %v360_v62  ;;  %v1241_v26 = vpop.f32.mrb[17].mxu1 }
 0x10a   : > { %v650_v27 = vpop.f32.mrb[18].mxu0 }
 0x10b   : > { %v503_v28 = vpop.f32.mrb[18].mxu1  ;;  %v1649_v29 = vadd.f32 %v650_v27, %v499_v25  ;;  %v1270_v30 = vpop.f32.mrb[19].mxu0 }
 0x10c   : > { %v504_v31 = vadd.f32 %v503_v28, %v365_v47  ;;  %v1244_v32 = vpop.f32.mrb[19].mxu1 }
 0x10e   : > { %v655_v33 = vpop.f32.mrb[20].mxu0 }
 0x10f   : > { %v1651_v34 = vadd.f32 %v655_v33, %v504_v31  ;;  %v508_v35 = vpop.f32.mrb[20].mxu1  ;;  %v1273_v36 = vpop.f32.mrb[21].mxu0 }
 0x110   : > { %v509_v37 = vadd.f32 %v508_v35, %v370_v51  ;;  %v1247_v38 = vpop.f32.mrb[21].mxu1 }
 0x112   : > { %v660_v39 = vpop.f32.mrb[22].mxu0 }
 0x113   : > { %v1653_v40 = vadd.f32 %v660_v39, %v509_v37  ;;  %v513_v41 = vpop.f32.mrb[22].mxu1  ;;  %v1276_v42 = vpop.f32.mrb[23].mxu0 }
 0x114   : > { %v514_v43 = vadd.f32 %v513_v41, %v375_v55  ;;  %v1250_v44 = vpop.f32.mrb[23].mxu1 }
 0x116   : > { %v665_v45 = vpop.f32.mrb[24].mxu0 }
 0x117   : > { %v1655_v46 = vadd.f32 %v665_v45, %v514_v43  ;;  %v518_v48 = vpop.f32.mrb[24].mxu1  ;;  %v1279_v47 = vpop.f32.mrb[25].mxu0 }
 0x118   : > { %v519_v49 = vadd.f32 %v518_v48, %v380_v59  ;;  %v1253_v50 = vpop.f32.mrb[25].mxu1 }
 0x11a   : > { %v670_v52 = vpop.f32.mrb[26].mxu0 }
 0x11b   : > { %v1657_v53 = vadd.f32 %v670_v52, %v519_v49  ;;  %v1282_v54 = vpop.f32.mrb[27].mxu0 }
 0x11e   : > { %v950_v51 = vpop.f32.mrb[28].mxu0 }
 0x11f   : > { %v1316_v56 = vpop.f32.mrb[29].mxu0 }
 0x122   : > { %v955_v57 = vpop.f32.mrb[30].mxu0 }
 0x123   : > { %v1319_v58 = vpop.f32.mrb[31].mxu0 }
 0x126   : > { %v960_v60 = vpop.f32.mrb[32].mxu0 }
 0x127   : > { %v1322_v61 = vpop.f32.mrb[33].mxu0 }
 0x12a   : > { %v965_v55 = vpop.f32.mrb[34].mxu0 }
 0x12b   : > { %v1325_v62 = vpop.f32.mrb[35].mxu0 }
 0x12e   : > { %v970_v63 = vpop.f32.mrb[36].mxu0 }
 0x12f   : > { %v1328_v0 = vpop.f32.mrb[37].mxu0 }
 0x132   : > { %v975_v1 = vpop.f32.mrb[38].mxu0 }
 0x133   : > { %v1331_v2 = vpop.f32.mrb[39].mxu0 }
 0x136   : > { %v980_v3 = vpop.f32.mrb[40].mxu0 }
 0x137   : > { %v1334_v59 = vpop.f32.mrb[41].mxu0 }
 0x13a   : > { %v985_v4 = vpop.f32.mrb[42].mxu0 }
 0x13b   : > { %v1337_v6 = vpop.f32.mrb[43].mxu0 }
 0x13e   : > { %v990_v7 = vpop.f32.mrb[44].mxu0 }
 0x13f   : > { %v1340_v8 = vpop.f32.mrb[45].mxu0 }
 0x158   : > { %v790_v9 = vpop.f32.mrb[26].mxu1 }
 0x159   : > { %v834_v10 = vadd.f32 %v790_v9, %v1641_v5  ;;  %v1287_v12 = vpop.f32.mrb[27].mxu1 }
 0x15b   : > { %v994_v14 = vadd.f32 %v950_v51, %v834_v10 }
 0x15c   : > { %v795_v15 = vpop.f32.mrb[28].mxu1 }
 0x15d   : > { %v1010_v16 = vadd.f32 %v1140_v13, %v994_v14  ;;  %v835_v18 = vadd.f32 %v795_v15, %v1643_v11  ;;  %v1290_v19 = vpop.f32.mrb[29].mxu1 }
 0x15f   : > { %1019 = vst [vmem:[%s1667_s17] sm:$0xff] %v1010_v16  ;;  %v995_v5 = vadd.f32 %v955_v57, %v835_v18 }
 0x160   : > { %v800_v20 = vpop.f32.mrb[30].mxu1 }
 0x161   : > { %v1011_v21 = vadd.f32 %v1140_v13, %v995_v5  ;;  %v836_v22 = vadd.f32 %v800_v20, %v1645_v17  ;;  %v1293_v24 = vpop.f32.mrb[31].mxu1 }
 0x163   : > { %1020 = vst [vmem:[%s1667_s17 + $0x8] sm:$0xff] %v1011_v21  ;;  %v996_v25 = vadd.f32 %v960_v60, %v836_v22 }
 0x164   : > { %v805_v26 = vpop.f32.mrb[32].mxu1 }
 0x165   : > { %v1012_v27 = vadd.f32 %v1140_v13, %v996_v25  ;;  %v837_v28 = vadd.f32 %v805_v26, %v1647_v23  ;;  %v1296_v30 = vpop.f32.mrb[33].mxu1 }
 0x167   : > { %1021 = vst [vmem:[%s1667_s17 + $0x10] sm:$0xff] %v1012_v27  ;;  %v997_v31 = vadd.f32 %v965_v55, %v837_v28 }
 0x168   : > { %v810_v11 = vpop.f32.mrb[34].mxu1 }
 0x169   : > { %v1013_v32 = vadd.f32 %v1140_v13, %v997_v31  ;;  %v838_v33 = vadd.f32 %v810_v11, %v1649_v29  ;;  %v1299_v35 = vpop.f32.mrb[35].mxu1 }
 0x16b   : > { %1022 = vst [vmem:[%s1667_s17 + $0x18] sm:$0xff] %v1013_v32  ;;  %v998_v36 = vadd.f32 %v970_v63, %v838_v33 }
 0x16c   : > { %v815_v17 = vpop.f32.mrb[36].mxu1 }
 0x16d   : > { %v1014_v37 = vadd.f32 %v1140_v13, %v998_v36  ;;  %v839_v38 = vadd.f32 %v815_v17, %v1651_v34  ;;  %v1302_v39 = vpop.f32.mrb[37].mxu1 }
 0x16f   : > { %1023 = vst [vmem:[%s1667_s17 + $0x20] sm:$0xff] %v1014_v37  ;;  %v999_v41 = vadd.f32 %v975_v1, %v839_v38 }
 0x170   : > { %v820_v23 = vpop.f32.mrb[38].mxu1 }
 0x171   : > { %v1015_v42 = vadd.f32 %v1140_v13, %v999_v41  ;;  %v840_v43 = vadd.f32 %v820_v23, %v1653_v40  ;;  %v1305_v44 = vpop.f32.mrb[39].mxu1 }
 0x173   : > { %1024 = vst [vmem:[%s1667_s17 + $0x28] sm:$0xff] %v1015_v42  ;;  %v1000_v29 = vadd.f32 %v980_v3, %v840_v43 }
 0x174   : > { %v825_v45 = vpop.f32.mrb[40].mxu1 }
 0x175   : > { %v1016_v48 = vadd.f32 %v1140_v13, %v1000_v29  ;;  %v841_v47 = vadd.f32 %v825_v45, %v1655_v46  ;;  %v1308_v49 = vpop.f32.mrb[41].mxu1 }
 0x177   : > { %1025 = vst [vmem:[%s1667_s17 + $0x30] sm:$0xff] %v1016_v48  ;;  %v1001_v50 = vadd.f32 %v985_v4, %v841_v47 }
 0x178   : > { %v830_v34 = vpop.f32.mrb[42].mxu1 }
 0x179   : > { %v1017_v52 = vadd.f32 %v1140_v13, %v1001_v50  ;;  %v842_v54 = vadd.f32 %v830_v34, %v1657_v53  ;;  %v1311_v51 = vpop.f32.mrb[43].mxu1 }
 0x17b   : > { %1026 = vst [vmem:[%s1667_s17 + $0x38] sm:$0xff] %v1017_v52  ;;  %v1002_v56 = vadd.f32 %v990_v7, %v842_v54 }
 0x17d   : > { %v1018_v57 = vadd.f32 %v1140_v13, %v1002_v56 }
 0x17f   : > { %1027 = vst [vmem:[%s1667_s17 + $0x40] sm:$0xff] %v1018_v57 }
 0x180 PF: > { %s15_s18 = sadd.s32 1, %s1366_s18  }
 0x181   : > { %p12_p4 = scmp.ge.s32.totalorder %s15_s18, 4  }
 0x183   :  { %14 = sbr.rel (!%p12_p4) target bundleno = 1 (0x1), region = 72 }

</bundles_post_ra>
